<compile_context>
chip_gen: v5e
topology: v5e:2x2
jax: 0.10.0
libtpu: 0.0.40
codegen_flags: <defaults>
</compile_context>

<pallas_src>
import functools

import jax
import jax.numpy as jnp
from jax.experimental import pallas as pl
from jax.experimental.pallas import tpu as pltpu

COMMITMENT_COST = 0.25


def _rup(x, m):
    return ((x + m - 1) // m) * m


# ---------------------------------------------------------------------------
# Pallas kernel: reduced distances, argmin, one-hot gather, partial SSE
# ---------------------------------------------------------------------------
def _vq_kernel(z_ref, e_ref, e2_ref, q_ref, sse_ref, *, kn_valid, m_valid, tm):
    z = z_ref[...]                        # (TM, Dp) f32
    e = e_ref[...]                        # (Kp, Dp) f32, resident across steps
    e2 = e2_ref[...]                      # (1, Kp)  f32, resident across steps
    TM, Dp = z.shape
    Kp = e.shape[0]

    # MXU: cross terms z . e^T
    cross = jax.lax.dot_general(
        z, e, (((1,), (1,)), ((), ())), preferred_element_type=jnp.float32
    )                                     # (TM, Kp)

    # ||z - e||^2 = ||z||^2 + ||e||^2 - 2 z.e ; the per-row ||z||^2 term is
    # constant over the codebook axis, so it is dropped for the argmin.
    dist = e2 - 2.0 * cross               # (TM, Kp)

    col = jax.lax.broadcasted_iota(jnp.int32, (TM, Kp), 1)
    if kn_valid < Kp:                     # mask zero-padded codebook rows
        dist = jnp.where(col < kn_valid, dist, jnp.inf)

    minv = jnp.min(dist, axis=1, keepdims=True)
    # first index achieving the minimum (torch.argmin tie-break)
    idx = jnp.min(jnp.where(dist <= minv, col, Kp), axis=1, keepdims=True)
    onehot = (col == idx).astype(jnp.float32)

    # codebook gather as one-hot matmul (MXU)
    q = jnp.dot(onehot, e, preferred_element_type=jnp.float32)   # (TM, Dp)
    q_ref[...] = q

    # partial sum of squared error for this M-tile (rows beyond M masked out)
    diff = q - z
    if m_valid % tm != 0:
        row = (jax.lax.broadcasted_iota(jnp.int32, (TM, Dp), 0)
               + pl.program_id(0) * tm)
        diff = jnp.where(row < m_valid, diff, 0.0)
    part = jnp.sum(diff * diff, axis=0, keepdims=True)            # (1, Dp)

    # lane-dense (8, Dp) output block: partial sums on sublane 0, zeros below
    row_id = jax.lax.broadcasted_iota(jnp.int32, (8, Dp), 0)
    sse_ref[...] = jnp.where(row_id == 0, part, 0.0)


# ---------------------------------------------------------------------------
# Wrapper: NCHW in / NCHW out, scalar VQ loss
# ---------------------------------------------------------------------------
def vector_quantizer_forward(z_nchw, embedding, commitment_cost=COMMITMENT_COST):
    B, C, H, W = z_nchw.shape
    Kn, D = embedding.shape
    assert C == D, "channel dim of z must equal embedding_dim"

    zf = jnp.transpose(z_nchw, (0, 2, 3, 1)).reshape(-1, D).astype(jnp.float32)
    M = zf.shape[0]

    TM = 128
    Mp = _rup(M, TM)
    Dp = _rup(D, 128)
    Kp = _rup(Kn, 128)
    ntiles = Mp // TM

    # pad once (skipped entirely when shapes are already tile-aligned)
    zp = zf if (Mp == M and Dp == D) else jnp.pad(zf, ((0, Mp - M), (0, Dp - D)))
    emb = embedding.astype(jnp.float32)
    ep = emb if (Kp == Kn and Dp == D) else jnp.pad(emb, ((0, Kp - Kn), (0, Dp - D)))
    # codebook squared norms: loop-invariant, hoisted out of the grid loop
    e2p = jnp.sum(ep * ep, axis=1)[None, :]                       # (1, Kp)

    q_pad, sse_part = pl.pallas_call(
        functools.partial(_vq_kernel, kn_valid=Kn, m_valid=M, tm=TM),
        out_shape=(
            jax.ShapeDtypeStruct((Mp, Dp), jnp.float32),
            jax.ShapeDtypeStruct((ntiles * 8, Dp), jnp.float32),
        ),
        grid=(ntiles,),
        in_specs=[
            pl.BlockSpec((TM, Dp), lambda i: (i, 0)),   # z rows, tiled over M
            pl.BlockSpec((Kp, Dp), lambda i: (0, 0)),   # full codebook, resident
            pl.BlockSpec((1, Kp), lambda i: (0, 0)),    # ||e||^2, resident
        ],
        out_specs=(
            pl.BlockSpec((TM, Dp), lambda i: (i, 0)),   # quantized rows
            pl.BlockSpec((8, Dp), lambda i: (i, 0)),    # per-tile SSE partials
        ),
        compiler_params=pltpu.CompilerParams(
            dimension_semantics=("parallel",),
        ),
    )(zp, ep, e2p)

    # tiny cross-tile reduction (JAX glue); padded lanes/rows contribute 0
    sse = jnp.sum(sse_part)
    # forward value: q_latent_loss + beta * e_latent_loss = (1+beta) * mse(q, z)
    loss = (1.0 + commitment_cost) * sse / (M * D)

    # straight-through estimator: forward value of z + (q - z).detach() is q
    # TODO(synk): gradients (straight-through + detached loss terms) would need
    # a jax.custom_vjp; this implements the forward pass only.
    q = q_pad[:M, :D].reshape(B, H, W, D)
    quantized = jnp.transpose(q, (0, 3, 1, 2))
    return quantized, loss


# ---------------------------------------------------------------------------
# Plain-JAX reference of the torch math (sanity check in __main__)
# ---------------------------------------------------------------------------
def _reference(z_nchw, embedding, beta):
    B, C, H, W = z_nchw.shape
    zf = jnp.transpose(z_nchw, (0, 2, 3, 1)).reshape(-1, C)
    d = (jnp.sum(zf ** 2, axis=1, keepdims=True)
         + jnp.sum(embedding ** 2, axis=1)[None, :]
         - 2.0 * zf @ embedding.T)
    idx = jnp.argmin(d, axis=1)
    q = embedding[idx]
    loss = (1.0 + beta) * jnp.mean((q - zf) ** 2)
    q_nchw = jnp.transpose(q.reshape(B, H, W, C), (0, 3, 1, 2))
    return q_nchw, loss


if __name__ == "__main__":
    key = jax.random.PRNGKey(0)
    k_z, k_e = jax.random.split(key)

    B, D, H, W = 2, 64, 16, 16        # z: (B, embedding_dim, H, W)
    NUM_EMBEDDINGS = 128

    z = jax.random.normal(k_z, (B, D, H, W), jnp.float32)
    embedding = jax.random.uniform(
        k_e, (NUM_EMBEDDINGS, D), jnp.float32,
        minval=-1.0 / NUM_EMBEDDINGS, maxval=1.0 / NUM_EMBEDDINGS)

    fwd = jax.jit(vector_quantizer_forward)
    quantized, vq_loss = fwd(z, embedding)
    jax.block_until_ready(quantized)
    jax.block_until_ready(vq_loss)

    assert quantized.shape == z.shape
    assert vq_loss.shape == ()

    # sanity check against the plain-JAX reference
    q_ref, loss_ref = _reference(z, embedding, COMMITMENT_COST)
    assert jnp.allclose(vq_loss, loss_ref, rtol=1e-4, atol=1e-6), (vq_loss, loss_ref)
    zf = jnp.transpose(z, (0, 2, 3, 1)).reshape(-1, D)
    qf = jnp.transpose(quantized, (0, 2, 3, 1)).reshape(-1, D)
    rf = jnp.transpose(q_ref, (0, 2, 3, 1)).reshape(-1, D)
    d_sel = jnp.sum((qf - zf) ** 2, axis=1)
    d_ref = jnp.sum((rf - zf) ** 2, axis=1)
    # every selected code must be as close to z as the reference's (ties allowed)
    assert float(jnp.max(d_sel - d_ref)) < 1e-4

    print("KERNEL_OK")
</pallas_src>

<mosaic_0001>
module attributes {stable_mosaic.version = 11 : i64} {
  func.func @_vq_kernel(%arg0: i32, %arg1: memref<128x128xf32, #tpu.memory_space<vmem>>, %arg2: memref<128x128xf32, #tpu.memory_space<vmem>>, %arg3: memref<1x128xf32, #tpu.memory_space<vmem>>, %arg4: memref<128x128xf32, #tpu.memory_space<vmem>>, %arg5: memref<8x128xf32, #tpu.memory_space<vmem>>) attributes {dimension_semantics = [#tpu.dimension_semantics<parallel>], iteration_bounds = array<i64: 4>, scalar_prefetch = 0 : i64, scratch_operands = 0 : i64, tpu.core_type = #tpu.core_type<tc>, window_params = [{transform_indices = @transform_0, window_bounds = array<i64: 128, 128>}, {pipeline_mode = #tpu.pipeline_mode<synchronous>, transform_indices = @transform_1, window_bounds = array<i64: 128, 128>}, {pipeline_mode = #tpu.pipeline_mode<synchronous>, transform_indices = @transform_2, window_bounds = array<i64: 1, 128>}, {transform_indices = @transform_3, window_bounds = array<i64: 128, 128>}, {transform_indices = @transform_4, window_bounds = array<i64: 8, 128>}]} {
    %c0 = arith.constant 0 : index
    %c0_0 = arith.constant 0 : index
    %0 = vector.load %arg1[%c0, %c0_0] : memref<128x128xf32, #tpu.memory_space<vmem>>, vector<128x128xf32>
    %c0_1 = arith.constant 0 : index
    %c0_2 = arith.constant 0 : index
    %1 = vector.load %arg2[%c0_1, %c0_2] : memref<128x128xf32, #tpu.memory_space<vmem>>, vector<128x128xf32>
    %c0_3 = arith.constant 0 : index
    %c0_4 = arith.constant 0 : index
    %2 = vector.load %arg3[%c0_3, %c0_4] : memref<1x128xf32, #tpu.memory_space<vmem>>, vector<1x128xf32>
    %cst = arith.constant dense<0.000000e+00> : vector<128x128xf32>
    %3 = tpu.matmul %0, %1, %cst {dimension_numbers = #tpu.dot_dimension_numbers<[1], [1], [0], [0], [0, 0, 1, 0], [], []>} : vector<128x128xf32>, vector<128x128xf32>, vector<128x128xf32> -> vector<128x128xf32>
    %cst_5 = arith.constant 2.000000e+00 : f32
    %4 = vector.broadcast %cst_5 : f32 to vector<128x128xf32>
    %5 = arith.mulf %4, %3 : vector<128x128xf32>
    %6 = vector.broadcast %2 : vector<1x128xf32> to vector<128x128xf32>
    %7 = arith.subf %6, %5 : vector<128x128xf32>
    %8 = tpu.iota {dimensions = array<i32: 1>} : vector<128x128xi32>
    %cst_6 = arith.constant dense<0x7F800000> : vector<128xf32>
    %9 = vector.multi_reduction <minimumf>, %7, %cst_6 [1] : vector<128x128xf32> to vector<128xf32>
    %10 = vector.shape_cast %9 : vector<128xf32> to vector<128x1xf32>
    %11 = vector.broadcast %10 : vector<128x1xf32> to vector<128x128xf32>
    %12 = arith.cmpf ole, %7, %11 : vector<128x128xf32>
    %c128_i32 = arith.constant 128 : i32
    %13 = vector.broadcast %c128_i32 : i32 to vector<128x128xi32>
    %14 = arith.select %12, %8, %13 : vector<128x128xi1>, vector<128x128xi32>
    %cst_7 = arith.constant dense<2147483647> : vector<128xi32>
    %15 = vector.multi_reduction <minsi>, %14, %cst_7 [1] : vector<128x128xi32> to vector<128xi32>
    %16 = vector.shape_cast %15 : vector<128xi32> to vector<128x1xi32>
    %17 = vector.broadcast %16 : vector<128x1xi32> to vector<128x128xi32>
    %18 = arith.cmpi eq, %8, %17 : vector<128x128xi32>
    %19 = arith.extui %18 : vector<128x128xi1> to vector<128x128xi32>
    %20 = arith.sitofp %19 : vector<128x128xi32> to vector<128x128xf32>
    %cst_8 = arith.constant dense<0.000000e+00> : vector<128x128xf32>
    %21 = tpu.matmul %20, %1, %cst_8 {dimension_numbers = #tpu.dot_dimension_numbers<[1], [0], [0], [1], [0, 0, 1, 1], [], []>} : vector<128x128xf32>, vector<128x128xf32>, vector<128x128xf32> -> vector<128x128xf32>
    %c0_9 = arith.constant 0 : index
    %c0_10 = arith.constant 0 : index
    %22 = vector.load %arg4[%c0_9, %c0_10] : memref<128x128xf32, #tpu.memory_space<vmem>>, vector<128x128xf32>
    tpu.vector_store %arg4[%c0_9, %c0_10], %21 {strides = array<i32>} : memref<128x128xf32, #tpu.memory_space<vmem>>, vector<128x128xf32>,
    %23 = arith.subf %21, %0 : vector<128x128xf32>
    %24 = arith.mulf %23, %23 : vector<128x128xf32>
    %cst_11 = arith.constant dense<0.000000e+00> : vector<128xf32>
    %25 = vector.multi_reduction <add>, %24, %cst_11 [0] : vector<128x128xf32> to vector<128xf32>
    %26 = vector.shape_cast %25 : vector<128xf32> to vector<1x128xf32>
    %27 = tpu.iota {dimensions = array<i32: 0>} : vector<8x128xi32>
    %c0_i32 = arith.constant 0 : i32
    %28 = vector.broadcast %c0_i32 : i32 to vector<8x128xi32>
    %29 = arith.cmpi eq, %27, %28 : vector<8x128xi32>
    %cst_12 = arith.constant 0.000000e+00 : f32
    %30 = vector.shape_cast %26 : vector<1x128xf32> to vector<1x128xf32>
    %31 = vector.broadcast %30 : vector<1x128xf32> to vector<8x128xf32>
    %32 = vector.broadcast %cst_12 : f32 to vector<8x128xf32>
    %33 = arith.select %29, %31, %32 : vector<8x128xi1>, vector<8x128xf32>
    %c0_13 = arith.constant 0 : index
    %c0_14 = arith.constant 0 : index
    %34 = vector.load %arg5[%c0_13, %c0_14] : memref<8x128xf32, #tpu.memory_space<vmem>>, vector<8x128xf32>
    tpu.vector_store %arg5[%c0_13, %c0_14], %33 {strides = array<i32>} : memref<8x128xf32, #tpu.memory_space<vmem>>, vector<8x128xf32>,
    return
  }
  func.func @transform_0(%arg0: i32) -> (i32, i32) {
    %c0_i32 = arith.constant 0 : i32
    %c0_i32_0 = arith.constant 0 : i32
    return %arg0, %c0_i32 : i32, i32
  }
  func.func @transform_1(%arg0: i32) -> (i32, i32) {
    %c0_i32 = arith.constant 0 : i32
    %c0_i32_0 = arith.constant 0 : i32
    %c0_i32_1 = arith.constant 0 : i32
    return %c0_i32, %c0_i32_0 : i32, i32
  }
  func.func @transform_2(%arg0: i32) -> (i32, i32) {
    %c0_i32 = arith.constant 0 : i32
    %c0_i32_0 = arith.constant 0 : i32
    %c0_i32_1 = arith.constant 0 : i32
    return %c0_i32, %c0_i32_0 : i32, i32
  }
  func.func @transform_3(%arg0: i32) -> (i32, i32) {
    %c0_i32 = arith.constant 0 : i32
    %c0_i32_0 = arith.constant 0 : i32
    return %arg0, %c0_i32 : i32, i32
  }
  func.func @transform_4(%arg0: i32) -> (i32, i32) {
    %c0_i32 = arith.constant 0 : i32
    %c0_i32_0 = arith.constant 0 : i32
    return %arg0, %c0_i32 : i32, i32
  }
}

</mosaic_0001>

<bundles_post_ra>
// kernel: vector_quantizer_forward.1
= control target key start
LH: loop header
LB: loop body
LE: loop exit
PB: predicated region body
PF: predicated region fallthrough
CT: control target
= control target key end

     0   :  { %10 = vsyncpa [#allocation3], 0  ;;  %s1835_s0 = inlined_call_operand.vmem [shape: f32[512,128], index: 0, kind: input, shape index: {}]   ;;  %s1836_s1 = inlined_call_operand.vmem [shape: f32[128,128], index: 1, kind: input, shape index: {}]   ;;  %s1837_s2 = inlined_call_operand.vmem [shape: f32[1,128], index: 2, kind: input, shape index: {}]   ;;  %s1838_s3 = inlined_call_operand.hbm [shape: f32[512,128], index: 3, kind: output, shape index: {0}]   ;;  %s1839_s4 = inlined_call_operand.vmem [shape: f32[32,128], index: 4, kind: output, shape index: {1}]  }
   0x1   :  { %12 = vsyncpa [#allocation3 + $0x1], 0  ;;  %s1174_s15 = smov 0   ;;  %s1176_s16 = smov 0  }
   0x2   :  { %s1178_s17 = smov 0   ;;  %s1180_s18 = smov 0  }
   0x3 LB: > { %s1195_s19 = sadd.s32 4294967295, %s1144_s18   ;;  %s929_s20 = sadd.s32 4294967294, %s1144_s18   ;;  %s1144_s18 = sphi %s1180_s18, %s1845_s18   ;;  %s1140_s17 = sphi %s1178_s17, %s1844_s17   ;;  %s1136_s16 = sphi %s1176_s16, %s1843_s16   ;;  %s1132_s15 = sphi %s1174_s15, %s1842_s15  }
   0x4   : > { %s1199_s21 = sadd.s32 1, %s1144_s18   ;;  %s93_s22 = sadd.s32 1, %s1140_s17 }
   0x5   : > { %s90_s23 = ssub.s32 %s1144_s18, %s1199_s21  ;;  %p103_p0 = scmp.ne.s32.totalorder %s1140_s17, %s1136_s16 }
   0x6   : > { %p91_p1 = scmp.eq.s32.totalorder %s90_s23, 0  ;;  %p104_p2 = scmp.eq.s32.totalorder %s1195_s19, 3 }
   0x7   : > { %p109_p3 = scmp.ne.s32.totalorder %s1136_s16, %s1132_s15  ;;  %p110_p4 = scmp.eq.s32.totalorder %s929_s20, 3 }
   0x8   : > { %s1210_s24 = scalar_select %p91_p1, %s1140_s17, %s93_s22  }
   0x9   : > { %p1212_p5 = por %p104_p2, %p103_p0  ;;  %p1216_p6 = por %p110_p4, %p109_p3 }
   0xa   : > { %p932_p7 = scmp.ge.s32.totalorder %s1144_s18, 1  ;;  %p169_p8 = scmp.lt.s32.totalorder %s1144_s18, 5 }
   0xc   : > { %p170_p9 = pnand %p932_p7, %p169_p8 }
   0xd   : > { %s934_s22 = sshll.u32 (!%p170_p9), %s1195_s19, 4  ;;  %s190_s6 = sand.u32 (!%p170_p9), 1, %s1136_s16  }
   0xe   : > { %173 = sbr.rel (%p170_p9) target bundleno = 822 (0x336), region = 32  ;;  %p200_p10 = scmp.lt.s32.totalorder (!%p170_p9), %s934_s22, 63 }
   0xf   : > { %s933_s7 = sshll.u32 (!%p170_p9), %s190_s6, 7  ;;  %s974_s9 = sshll.u32 (!%p170_p9), %s1195_s19, 7 }
  0x10   : > { %s1761_s8 = scalar_lea.vmem (!%p170_p9), [#allocation2], %s933_s7  ;;  %s836_s12 = scalar_lea.hbm (!%p170_p9), %s1838_s3, %s974_s9 }
  0x11   : > { %s837_s13 = sshll.u32 (!%p170_p9), %s1761_s8, 4  ;;  %s839_s14 = sshll.u32 (!%p170_p9), %s836_s12, 4  ;;  %s838_s13 = int_to_ptr.vmem [resolvable:$true] %s837_s13  ;;  %s840_s14 = int_to_ptr.hbm [resolvable:$true] %s839_s14 }
  0x12   : > { %s821_s20 = scalar_lea.sflag (!%p170_p9), [#allocation3], %s190_s6 }
  0x13   : > { %v1225_v0 = vld [vmem:[%s1836_s1 + $0x78] sm:$0xff]  ;;  %v1232_v1 = vld [vmem:[%s1836_s1 + $0x70] sm:$0xff]  ;;  %v1242_v2 = vld [vmem:[%s1836_s1 + $0x68] sm:$0xff]  ;;  %s1847_s22 = smov (!%p200_p10, %s934_s22), 63 }
  0x14   : > { %243 = vmatpush.xpose.msra.mxu0 %v1225_v0  ;;  %975 = vmatpush.xpose.msra.mxu2 %v1225_v0  ;;  %v1249_v3 = vld [vmem:[%s1836_s1 + $0x60] sm:$0xff]  ;;  %v1257_v4 = vld [vmem:[%s1836_s1 + $0x58] sm:$0xff]  ;;  %v1264_v5 = vld [vmem:[%s1836_s1 + $0x50] sm:$0xff]  ;;  %s935_s23 = sshll.u32 %s1847_s22, 3  ;;  %s1096_s22 = sshra.s32 %s840_s14, 4  ;;  %s1097_s22 = int_to_ptr.hbm [resolvable:$true] %s1096_s22 }
  0x15   : > { %976 = vmatpush.xpose.msra.mxu3 %v1225_v0  ;;  %1007 = vmatpush.msra.mxu1 %v1225_v0  ;;  %v1272_v6 = vld [vmem:[%s1836_s1 + $0x48] sm:$0xff]  ;;  %v1279_v7 = vld [vmem:[%s1836_s1 + $0x40] sm:$0xff]  ;;  %v1287_v8 = vld [vmem:[%s1836_s1 + $0x38] sm:$0xff]  ;;  %s1366_s29 = scalar_lea.vmem %s1835_s0, %s935_s23  ;;  %s1098_s23 = scalar_lea.hbm %s1097_s22, 128 }
  0x16   : > { %v1294_v9 = vld [vmem:[%s1836_s1 + $0x30] sm:$0xff]  ;;  %v1302_v10 = vld [vmem:[%s1836_s1 + $0x28] sm:$0xff]  ;;  %v1309_v11 = vld [vmem:[%s1836_s1 + $0x20] sm:$0xff]  ;;  %p1099_p11 = scmp.ne.s32.totalorder %s1097_s22, %s1098_s23  ;;  %p1103_p0 = scmp.lt.s32.totalorder %s1097_s22, %s1838_s3 }
  0x17   : > { %1009 = vmatpush.msra.mxu1 %v1232_v1  ;;  %v1317_v12 = vld [vmem:[%s1836_s1 + $0x18] sm:$0xff]  ;;  %v1324_v13 = vld [vmem:[%s1836_s1 + $0x10] sm:$0xff]  ;;  %v1332_v14 = vld [vmem:[%s1836_s1 + $0x8] sm:$0xff] }
  0x18   : > { %244 = vmatpush.xpose.msra.mxu0 %v1232_v1  ;;  %977 = vmatpush.xpose.msra.mxu2 %v1232_v1  ;;  %v1339_v15 = vld [vmem:[%s1836_s1] sm:$0xff]  ;;  %v1375_v17 = vld [vmem:[%s1366_s29 + $0x28] sm:$0xff]  ;;  %v1394_v20 = vld [vmem:[%s1366_s29 + $0x30] sm:$0xff]  ;;  %p1100_p12 = pnand %p1099_p11, %p1212_p5 }
  0x19   : > { %978 = vmatpush.xpose.msra.mxu3 %v1232_v1  ;;  %1011 = vmatpush.msra.mxu1 %v1242_v2  ;;  %v1372_v16 = vld [vmem:[%s1366_s29] sm:$0xff]  ;;  %v1391_v19 = vld [vmem:[%s1366_s29 + $0x8] sm:$0xff]  ;;  %v1410_v22 = vld [vmem:[%s1366_s29 + $0x10] sm:$0xff] }
  0x1a   : > { %v1380_v18 = vld [vmem:[%s1366_s29 + $0x60] sm:$0xff]  ;;  %v1398_v21 = vld [vmem:[%s1366_s29 + $0x68] sm:$0xff]  ;;  %v1413_v23 = vld [vmem:[%s1366_s29 + $0x38] sm:$0xff]  ;;  %p1101_p13 = pneg %p1100_p12 }
  0x1b   : > { %1013 = vmatpush.msra.mxu1 %v1249_v3  ;;  %v1417_v24 = vld [vmem:[%s1366_s29 + $0x70] sm:$0xff]  ;;  %v1429_v25 = vld [vmem:[%s1366_s29 + $0x18] sm:$0xff]  ;;  %v1432_v26 = vld [vmem:[%s1366_s29 + $0x40] sm:$0xff] }
  0x1c   : > { %245 = vmatpush.xpose.msra.mxu0 %v1242_v2  ;;  %979 = vmatpush.xpose.msra.mxu2 %v1242_v2  ;;  %v1436_v27 = vld [vmem:[%s1366_s29 + $0x78] sm:$0xff]  ;;  %v1448_v28 = vld [vmem:[%s1366_s29 + $0x20] sm:$0xff]  ;;  %v1451_v29 = vld [vmem:[%s1366_s29 + $0x48] sm:$0xff] }
  0x1d   : > { %980 = vmatpush.xpose.msra.mxu3 %v1242_v2  ;;  %1015 = vmatpush.msra.mxu1 %v1257_v4  ;;  %v1460_v30 = vld [vmem:[%s1366_s29 + $0x50] sm:$0xff]  ;;  %v1465_v31 = vld [vmem:[%s1366_s29 + $0x58] sm:$0xff]  ;;  %v1081_v37 = vld [vmem:[%s1837_s2] ss:$0 sm:$0xff]  ;;  %s1102_s29 = scalar_lea.hbm %s1838_s3, 512 }
  0x1e   : > { %p1104_p1 = scmp.lt.s32.totalorder %s1102_s29, %s1098_s23 }
  0x1f   : > { %1017 = vmatpush.msra.mxu1 %v1264_v5 }
  0x20   : > { %246 = vmatpush.xpose.msra.mxu0 %v1249_v3  ;;  %981 = vmatpush.xpose.msra.mxu2 %v1249_v3  ;;  %p1105_p2 = por %p1104_p1, %p1103_p0 }
  0x21   : > { %982 = vmatpush.xpose.msra.mxu3 %v1249_v3  ;;  %1019 = vmatpush.msra.mxu1 %v1272_v6 }
  0x22   : > { %p1106_p3 = pnand %p1105_p2, %p1101_p13 }
  0x23   : > { %1021 = vmatpush.msra.mxu1 %v1279_v7 }
  0x24   : > { %247 = vmatpush.xpose.msra.mxu0 %v1257_v4  ;;  %983 = vmatpush.xpose.msra.mxu2 %v1257_v4 }
  0x25   : > { %984 = vmatpush.xpose.msra.mxu3 %v1257_v4  ;;  %1023 = vmatpush.msra.mxu1 %v1287_v8 }
  0x27   : > { %1025 = vmatpush.msra.mxu1 %v1294_v9 }
  0x28   : > { %248 = vmatpush.xpose.msra.mxu0 %v1264_v5  ;;  %985 = vmatpush.xpose.msra.mxu2 %v1264_v5 }
  0x29   : > { %986 = vmatpush.xpose.msra.mxu3 %v1264_v5  ;;  %1027 = vmatpush.msra.mxu1 %v1302_v10 }
  0x2b   : > { %1029 = vmatpush.msra.mxu1 %v1309_v11 }
  0x2c   : > { %249 = vmatpush.xpose.msra.mxu0 %v1272_v6  ;;  %987 = vmatpush.xpose.msra.mxu2 %v1272_v6 }
  0x2d   : > { %988 = vmatpush.xpose.msra.mxu3 %v1272_v6  ;;  %1031 = vmatpush.msra.mxu1 %v1317_v12 }
  0x2f   : > { %1033 = vmatpush.msra.mxu1 %v1324_v13 }
  0x30   : > { %250 = vmatpush.xpose.msra.mxu0 %v1279_v7  ;;  %989 = vmatpush.xpose.msra.mxu2 %v1279_v7 }
  0x31   : > { %990 = vmatpush.xpose.msra.mxu3 %v1279_v7  ;;  %1035 = vmatpush.msra.mxu1 %v1332_v14 }
  0x33   : > { %1037 = vmatpush.msra.mxu1 %v1339_v15 }
  0x34   : > { %251 = vmatpush.xpose.msra.mxu0 %v1287_v8  ;;  %991 = vmatpush.xpose.msra.mxu2 %v1287_v8 }
  0x35   : > { %992 = vmatpush.xpose.msra.mxu3 %v1287_v8 }
  0x38   : > { %252 = vmatpush.xpose.msra.mxu0 %v1294_v9  ;;  %993 = vmatpush.xpose.msra.mxu2 %v1294_v9 }
  0x39   : > { %994 = vmatpush.xpose.msra.mxu3 %v1294_v9 }
  0x3c   : > { %253 = vmatpush.xpose.msra.mxu0 %v1302_v10  ;;  %995 = vmatpush.xpose.msra.mxu2 %v1302_v10 }
  0x3d   : > { %996 = vmatpush.xpose.msra.mxu3 %v1302_v10 }
  0x40   : > { %254 = vmatpush.xpose.msra.mxu0 %v1309_v11  ;;  %997 = vmatpush.xpose.msra.mxu2 %v1309_v11 }
  0x41   : > { %998 = vmatpush.xpose.msra.mxu3 %v1309_v11 }
  0x44   : > { %255 = vmatpush.xpose.msra.mxu0 %v1317_v12  ;;  %999 = vmatpush.xpose.msra.mxu2 %v1317_v12 }
  0x45   : > { %1000 = vmatpush.xpose.msra.mxu3 %v1317_v12 }
  0x48   : > { %256 = vmatpush.xpose.msra.mxu0 %v1324_v13  ;;  %1001 = vmatpush.xpose.msra.mxu2 %v1324_v13 }
  0x49   : > { %1002 = vmatpush.xpose.msra.mxu3 %v1324_v13 }
  0x4c   : > { %257 = vmatpush.xpose.msra.mxu0 %v1332_v14  ;;  %1003 = vmatpush.xpose.msra.mxu2 %v1332_v14 }
  0x4d   : > { %1004 = vmatpush.xpose.msra.mxu3 %v1332_v14 }
  0x50   : > { %258 = vmatpush.xpose.msra.mxu0 %v1339_v15  ;;  %1005 = vmatpush.xpose.msra.mxu2 %v1339_v15 }
  0x51   : > { %1006 = vmatpush.xpose.msra.mxu3 %v1339_v15 }
  0x53   : > { %259 = vmatmul.f32.vlgmr.msra.gmra.mxu0 %v1372_v16  ;;  %274 = vmatmul.f32.vlgmr.msra.gmra.mxu2 %v1375_v17 }
  0x54   : > { %681 = vmatpush.msrb.mxu0 %v1225_v0  ;;  %295 = vmatmul.f32.vlgmr.msra.gmra.mxu3 %v1380_v18 }
  0x55   : > { %1008 = vmatpush.msrb.mxu3 %v1225_v0 }
  0x56   : > { %682 = vmatpush.msrb.mxu0 %v1232_v1 }
  0x57   : > { %1010 = vmatpush.msrb.mxu3 %v1232_v1 }
  0x58   : > { %683 = vmatpush.msrb.mxu0 %v1242_v2 }
  0x59   : > { %1012 = vmatpush.msrb.mxu3 %v1242_v2 }
  0x5a   : > { %684 = vmatpush.msrb.mxu0 %v1249_v3 }
  0x5b   : > { %1014 = vmatpush.msrb.mxu3 %v1249_v3  ;;  %262 = vmatmul.f32.gmra.mxu0 %v1391_v19 }
  0x5c   : > { %685 = vmatpush.msrb.mxu0 %v1257_v4  ;;  %277 = vmatmul.f32.gmra.mxu2 %v1394_v20 }
  0x5d   : > { %298 = vmatmul.f32.gmra.mxu3 %v1398_v21 }
  0x5e   : > { %686 = vmatpush.msrb.mxu0 %v1264_v5  ;;  %1016 = vmatpush.msrb.mxu3 %v1257_v4 }
  0x60   : > { %687 = vmatpush.msrb.mxu0 %v1272_v6  ;;  %1018 = vmatpush.msrb.mxu3 %v1264_v5 }
  0x62   : > { %688 = vmatpush.msrb.mxu0 %v1279_v7  ;;  %1020 = vmatpush.msrb.mxu3 %v1272_v6 }
  0x63   : > { %265 = vmatmul.f32.gmra.mxu0 %v1410_v22 }
  0x64   : > { %689 = vmatpush.msrb.mxu0 %v1287_v8  ;;  %280 = vmatmul.f32.gmra.mxu2 %v1413_v23 }
  0x65   : > { %301 = vmatmul.f32.gmra.mxu3 %v1417_v24 }
  0x66   : > { %690 = vmatpush.msrb.mxu0 %v1294_v9  ;;  %1022 = vmatpush.msrb.mxu3 %v1279_v7 }
  0x68   : > { %691 = vmatpush.msrb.mxu0 %v1302_v10  ;;  %1024 = vmatpush.msrb.mxu3 %v1287_v8 }
  0x6a   : > { %692 = vmatpush.msrb.mxu0 %v1309_v11  ;;  %1026 = vmatpush.msrb.mxu3 %v1294_v9 }
  0x6b   : > { %268 = vmatmul.f32.gmra.mxu0 %v1429_v25 }
  0x6c   : > { %693 = vmatpush.msrb.mxu0 %v1317_v12  ;;  %283 = vmatmul.f32.gmra.mxu2 %v1432_v26 }
  0x6d   : > { %304 = vmatmul.f32.gmra.mxu3 %v1436_v27 }
  0x6e   : > { %694 = vmatpush.msrb.mxu0 %v1324_v13  ;;  %1028 = vmatpush.msrb.mxu3 %v1302_v10 }
  0x70   : > { %695 = vmatpush.msrb.mxu0 %v1332_v14  ;;  %1030 = vmatpush.msrb.mxu3 %v1309_v11 }
  0x72   : > { %696 = vmatpush.msrb.mxu0 %v1339_v15  ;;  %1032 = vmatpush.msrb.mxu3 %v1317_v12 }
  0x73   : > { %271 = vmatmul.f32.gmra.mxu0 %v1448_v28 }
  0x74   : > { %286 = vmatmul.f32.gmra.mxu2 %v1451_v29  ;;  %1034 = vmatpush.msrb.mxu3 %v1324_v13 }
  0x76   : > { %1036 = vmatpush.msrb.mxu3 %v1332_v14 }
  0x78   : > { %1038 = vmatpush.msrb.mxu3 %v1339_v15 }
  0x7c   : > { %289 = vmatmul.f32.gmra.mxu2 %v1460_v30 }
  0x84   : > { %292 = vmatmul.f32.gmra.mxu2 %v1465_v31 }
  0xd0   : > { %v260_v32 = vpop.f32.mrf.mxu0 }
  0xd1   : > { %v308_v49 = vmul.f32 2.0, %v260_v32 }
  0xd3   : > { %v1477_v52 = vsub.f32 %v1081_v37, %v308_v49 }
  0xd6   : > { %v275_v33 = vpop.f32.mrf.mxu2 }
  0xd7   : > { %v296_v47 = vpop.f32.mrf.mxu3  ;;  %v313_v56 = vmul.f32 2.0, %v275_v33  ;;  %v343_v33 = vlaneseq }
  0xd8   : > { %v263_v34 = vpop.f32.mrf.mxu0  ;;  %v320_v15 = vmul.f32 2.0, %v296_v47 }
  0xd9   : > { %v309_v57 = vmul.f32 2.0, %v263_v34  ;;  %v332_v59 = vsub.f32 %v1081_v37, %v313_v56  ;;  %v1505_v34 = vand.u32 127, %v343_v33 }
  0xda   : > { %v1501_v32 = vsub.f32 %v1081_v37, %v320_v15 }
  0xdb   : > { %v1480_v58 = vsub.f32 %v1081_v37, %v309_v57 }
  0xdf   : > { %v278_v35 = vpop.f32.mrf.mxu2 }
  0xe0   : > { %v314_v36 = vmul.f32 2.0, %v278_v35  ;;  %v266_v38 = vpop.f32.mrf.mxu0  ;;  %v299_v54 = vpop.f32.mrf.mxu3 }
  0xe1   : > { %v310_v39 = vmul.f32 2.0, %v266_v38  ;;  %v321_v60 = vmul.f32 2.0, %v299_v54 }
  0xe2   : > { %v1471_v40 = vsub.f32 %v1081_v37, %v314_v36 }
  0xe3   : > { %v329_v41 = vsub.f32 %v1081_v37, %v310_v39  ;;  %v1483_v0 = vsub.f32 %v1081_v37, %v321_v60 }
  0xe4   : > { %357 = vmin.xlane.f32.xlu2 %v1471_v40 }
  0xe5   : > { %349 = vmin.xlane.f32.xlu0 %v329_v41 }
  0xe7   : > { %v281_v42 = vpop.f32.mrf.mxu2 }
  0xe8   : > { %v315_v43 = vmul.f32 2.0, %v281_v42  ;;  %v269_v44 = vpop.f32.mrf.mxu0  ;;  %v302_v62 = vpop.f32.mrf.mxu3 }
  0xe9   : > { %v311_v45 = vmul.f32 2.0, %v269_v44  ;;  %v322_v2 = vmul.f32 2.0, %v302_v62 }
  0xea   : > { %v1474_v46 = vsub.f32 %v1081_v37, %v315_v43 }
  0xeb   : > { %v330_v48 = vsub.f32 %v1081_v37, %v311_v45  ;;  %v1486_v4 = vsub.f32 %v1081_v37, %v322_v2 }
  0xec   : > { %359 = vmin.xlane.f32.xlu2 %v1474_v46 }
  0xed   : > { %351 = vmin.xlane.f32.xlu0 %v330_v48 }
  0xef   : > { %v284_v55 = vpop.f32.mrf.mxu2 }
  0xf0   : > { %v272_v50 = vpop.f32.mrf.mxu0  ;;  %v316_v61 = vmul.f32 2.0, %v284_v55  ;;  %v305_v5 = vpop.f32.mrf.mxu3 }
  0xf1   : > { %v312_v51 = vmul.f32 2.0, %v272_v50  ;;  %v323_v8 = vmul.f32 2.0, %v305_v5 }
  0xf2   : > { %v335_v1 = vsub.f32 %v1081_v37, %v316_v61 }
  0xf3   : > { %v331_v53 = vsub.f32 %v1081_v37, %v312_v51  ;;  %v1492_v10 = vsub.f32 %v1081_v37, %v323_v8 }
  0xf4   : > { %345 = vmin.xlane.f32.xlu2 %v1477_v52 }
  0xf5   : > { %353 = vmin.xlane.f32.xlu1 %v331_v53 }
  0xf7   : > { %v287_v63 = vpop.f32.mrf.mxu2 }
  0xf8   : > { %v317_v3 = vmul.f32 2.0, %v287_v63 }
  0xfa   : > { %v1488_v7 = vsub.f32 %v1081_v37, %v317_v3 }
  0xfc   : > { %347 = vmin.xlane.f32.xlu2 %v1480_v58 }
  0xfd   : > { %355 = vmin.xlane.f32.xlu1 %v332_v59 }
  0xff   : > { %v290_v6 = vpop.f32.mrf.mxu2 }
 0x100   : > { %v318_v9 = vmul.f32 2.0, %v290_v6 }
 0x102   : > { %v1494_v11 = vsub.f32 %v1081_v37, %v318_v9 }
 0x104   : > { %371 = vmin.xlane.f32.xlu2 %v1483_v0 }
 0x105   : > { %361 = vmin.xlane.f32.xlu1 %v335_v1 }
 0x107   : > { %v293_v12 = vpop.f32.mrf.mxu2 }
 0x108   : > { %v319_v13 = vmul.f32 2.0, %v293_v12 }
 0x10a   : > { %v1498_v14 = vsub.f32 %v1081_v37, %v319_v13 }
 0x10c   : > { %373 = vmin.xlane.f32.xlu2 %v1486_v4 }
 0x10d   : > { %363 = vmin.xlane.f32.xlu1 %v1488_v7 }
 0x114   : > { %375 = vmin.xlane.f32.xlu2 %v1492_v10 }
 0x115   : > { %365 = vmin.xlane.f32.xlu1 %v1494_v11 }
 0x11d   : > { %367 = vmin.xlane.f32.xlu1 %v1498_v14 }
 0x125   : > { %369 = vmin.xlane.f32.xlu1 %v1501_v32 }
 0x157   : > { %v358_v44 = vpop.xlane.xlu2 %357 }
 0x158   : > { %v350_v35 = vpop.xlane.xlu0 %349  ;;  %vm383_vm4 = vcmp.le.f32.partialorder %v1471_v40, %v358_v44 }
 0x159   : > { %vm379_vm0 = vcmp.le.f32.partialorder %v329_v41, %v350_v35  ;;  %v1536_v56 = vsel %vm383_vm4, %v1505_v34, 128 }
 0x15a   : > { %v1508_v36 = vsel %vm379_vm0, %v1505_v34, 128  ;;  %v494_v61 = vshra.s32 %v1536_v56, 16 }
 0x15b   : > { %v438_v38 = vshra.s32 %v1508_v36, 16 }
 0x15c   : > { %v1545_v62 = vcvt.s32.f32 %v494_v61 }
 0x15d   : > { %v1511_v39 = vcvt.s32.f32 %v438_v38 }
 0x15f   : > { %441 = vmin.xlane.f32.xlu0 %v1511_v39 }
 0x160   : > { %v352_v42 = vpop.xlane.xlu0 %351 }
 0x161   : > { %vm380_vm1 = vcmp.le.f32.partialorder %v330_v48, %v352_v42  ;;  %v360_v48 = vpop.xlane.xlu2 %359 }
 0x162   : > { %v1515_v37 = vsel %vm380_vm1, %v1505_v34, 128  ;;  %vm384_vm6 = vcmp.le.f32.partialorder %v1474_v46, %v360_v48 }
 0x163   : > { %v452_v43 = vshra.s32 %v1515_v37, 16  ;;  %v1550_v2 = vsel %vm384_vm6, %v1505_v34, 128 }
 0x164   : > { %v508_v3 = vshra.s32 %v1550_v2, 16 }
 0x165   : > { %v1518_v45 = vcvt.s32.f32 %v452_v43 }
 0x166   : > { %v1561_v8 = vcvt.s32.f32 %v508_v3 }
 0x167   : > { %455 = vmin.xlane.f32.xlu0 %v1518_v45 }
 0x168   : > { %v354_v41 = vpop.xlane.xlu1 %353 }
 0x169   : > { %vm381_vm2 = vcmp.le.f32.partialorder %v331_v53, %v354_v41  ;;  %v346_v57 = vpop.xlane.xlu2 %345 }
 0x16a   : > { %v1522_v47 = vsel %vm381_vm2, %v1505_v34, 128  ;;  %vm377_vm8 = vcmp.le.f32.partialorder %v1477_v52, %v346_v57 }
 0x16b   : > { %v466_v49 = vshra.s32 %v1522_v47, 16  ;;  %v1566_v12 = vsel %vm377_vm8, %v1505_v34, 128 }
 0x16c   : > { %v410_v13 = vshra.s32 %v1566_v12, 16 }
 0x16d   : > { %v1525_v50 = vcvt.s32.f32 %v466_v49 }
 0x16e   : > { %v1577_v38 = vcvt.s32.f32 %v410_v13  ;;  %v437_v13 = vand.u32 65535, %v1508_v36  ;;  %v465_v36 = vand.u32 65535, %v1522_v47  ;;  %v493_v47 = vand.u32 65535, %v1536_v56 }
 0x16f   : > { %469 = vmin.xlane.f32.xlu0 %v1525_v50  ;;  %v507_v56 = vand.u32 65535, %v1550_v2 }
 0x170   : > { %v356_v51 = vpop.xlane.xlu1 %355 }
 0x171   : > { %vm382_vm3 = vcmp.le.f32.partialorder %v332_v59, %v356_v51  ;;  %v348_v5 = vpop.xlane.xlu2 %347 }
 0x172   : > { %v1529_v54 = vsel %vm382_vm3, %v1505_v34, 128  ;;  %vm378_vm10 = vcmp.le.f32.partialorder %v1480_v58, %v348_v5 }
 0x173   : > { %v480_v55 = vshra.s32 %v1529_v54, 16  ;;  %v1582_v43 = vsel %vm378_vm10, %v1505_v34, 128 }
 0x174   : > { %v424_v44 = vshra.s32 %v1582_v43, 16 }
 0x175   : > { %v1533_v53 = vcvt.s32.f32 %v480_v55 }
 0x176   : > { %v1593_v49 = vcvt.s32.f32 %v424_v44 }
 0x177   : > { %483 = vmin.xlane.f32.xlu0 %v1533_v53 }
 0x178   : > { %v362_v60 = vpop.xlane.xlu1 %361 }
 0x179   : > { %vm385_vm5 = vcmp.le.f32.partialorder %v335_v1, %v362_v60  ;;  %v372_v35 = vpop.xlane.xlu2 %371 }
 0x17a   : > { %v1541_v59 = vsel %vm385_vm5, %v1505_v34, 128  ;;  %vm390_vm12 = vcmp.le.f32.partialorder %v1483_v0, %v372_v35  ;;  %v439_v35 = vcvt.s32.f32 %v437_v13 }
 0x17b   : > { %v522_v40 = vshra.s32 %v1541_v59, 16  ;;  %v1598_v51 = vsel %vm390_vm12, %v1505_v34, 128 }
 0x17c   : > { %v592_v57 = vshra.s32 %v1598_v51, 16 }
 0x17d   : > { %v1547_v63 = vcvt.s32.f32 %v522_v40 }
 0x17e   : > { %v1609_v61 = vcvt.s32.f32 %v592_v57  ;;  %v467_v57 = vcvt.s32.f32 %v465_v36 }
 0x17f   : > { %497 = vmin.xlane.f32.xlu0 %v1545_v62  ;;  %525 = vmin.xlane.f32.xlu2 %v1547_v63 }
 0x180   : > { %v364_v1 = vpop.xlane.xlu1 %363 }
 0x181   : > { %vm386_vm7 = vcmp.le.f32.partialorder %v1488_v7, %v364_v1  ;;  %v374_v55 = vpop.xlane.xlu2 %373 }
 0x182   : > { %v1557_v46 = vsel %vm386_vm7, %v1505_v34, 128  ;;  %vm391_vm14 = vcmp.le.f32.partialorder %v1486_v4, %v374_v55 }
 0x183   : > { %v536_v6 = vshra.s32 %v1557_v46, 16  ;;  %v1614_v1 = vsel %vm391_vm14, %v1505_v34, 128 }
 0x184   : > { %v606_v3 = vshra.s32 %v1614_v1, 16 }
 0x185   : > { %v1563_v9 = vcvt.s32.f32 %v536_v6 }
 0x186   : > { %v1620_v5 = vcvt.s32.f32 %v606_v3  ;;  %v521_v3 = vand.u32 65535, %v1541_v59 }
 0x187   : > { %511 = vmin.xlane.f32.xlu0 %v1561_v8  ;;  %539 = vmin.xlane.f32.xlu2 %v1563_v9 }
 0x188   : > { %v366_v7 = vpop.xlane.xlu1 %365 }
 0x189   : > { %vm387_vm9 = vcmp.le.f32.partialorder %v1494_v11, %v366_v7 }
 0x18a   : > { %v1573_v52 = vsel %vm387_vm9, %v1505_v34, 128 }
 0x18b   : > { %v550_v15 = vshra.s32 %v1573_v52, 16 }
 0x18d   : > { %v1579_v42 = vcvt.s32.f32 %v550_v15 }
 0x18f   : > { %413 = vmin.xlane.f32.xlu0 %v1577_v38  ;;  %553 = vmin.xlane.f32.xlu2 %v1579_v42 }
 0x190   : > { %v368_v11 = vpop.xlane.xlu1 %367 }
 0x191   : > { %vm388_vm11 = vcmp.le.f32.partialorder %v1498_v14, %v368_v11  ;;  %v451_v11 = vand.u32 65535, %v1515_v37  ;;  %v479_v37 = vand.u32 65535, %v1529_v54 }
 0x192   : > { %v1589_v58 = vsel %vm388_vm11, %v1505_v34, 128 }
 0x193   : > { %v564_v41 = vshra.s32 %v1589_v58, 16 }
 0x195   : > { %v1595_v48 = vcvt.s32.f32 %v564_v41  ;;  %v453_v41 = vcvt.s32.f32 %v451_v11  ;;  %v509_v11 = vcvt.s32.f32 %v507_v56 }
 0x197   : > { %427 = vmin.xlane.f32.xlu0 %v1593_v49  ;;  %567 = vmin.xlane.f32.xlu2 %v1595_v48 }
 0x198   : > { %v370_v14 = vpop.xlane.xlu1 %369 }
 0x199   : > { %vm389_vm13 = vcmp.le.f32.partialorder %v1501_v32, %v370_v14  ;;  %v376_v32 = vpop.xlane.xlu2 %375 }
 0x19a   : > { %v1605_v0 = vsel %vm389_vm13, %v1505_v34, 128  ;;  %vm392_vm15 = vcmp.le.f32.partialorder %v1492_v10, %v376_v32  ;;  %v481_v32 = vcvt.s32.f32 %v479_v37 }
 0x19b   : > { %v578_v60 = vshra.s32 %v1605_v0, 16  ;;  %v1623_v4 = vsel %vm392_vm15, %v1505_v34, 128 }
 0x19c   : > { %v620_v6 = vshra.s32 %v1623_v4, 16 }
 0x19d   : > { %v1611_v40 = vcvt.s32.f32 %v578_v60 }
 0x19e   : > { %v1627_v7 = vcvt.s32.f32 %v620_v6 }
 0x19f   : > { %595 = vmin.xlane.f32.xlu0 %v1609_v61  ;;  %581 = vmin.xlane.f32.xlu2 %v1611_v40 }
 0x1a7   : > { %609 = vmin.xlane.f32.xlu0 %v1620_v5 }
 0x1af   : > { %623 = vmin.xlane.f32.xlu0 %v1627_v7 }
 0x1d2   : > { %v1631_v15 = vpop.xlane.xlu0 %441 }
 0x1d3   : > { %vm443_vm0 = vcmp.eq.f32.partialorder %v1511_v39, %v1631_v15 }
 0x1d4   : > { %v444_v10 = vsel %vm443_vm0, %v439_v35, inf  ;;  %v523_v35 = vcvt.s32.f32 %v521_v3 }
 0x1d5   : > { %445 = vmin.xlane.f32.xlu1 %v444_v10 }
 0x1da   : > { %v1636_v44 = vpop.xlane.xlu0 %455 }
 0x1db   : > { %vm457_vm1 = vcmp.eq.f32.partialorder %v1518_v45, %v1636_v44 }
 0x1dc   : > { %v458_v55 = vsel %vm457_vm1, %v453_v41, inf }
 0x1dd   : > { %459 = vmin.xlane.f32.xlu1 %v458_v55 }
 0x1e2   : > { %v1641_v14 = vpop.xlane.xlu0 %469 }
 0x1e3   : > { %vm471_vm2 = vcmp.eq.f32.partialorder %v1525_v50, %v1641_v14  ;;  %v495_v50 = vcvt.s32.f32 %v493_v47 }
 0x1e4   : > { %v472_v39 = vsel %vm471_vm2, %v467_v57, inf }
 0x1e5   : > { %473 = vmin.xlane.f32.xlu1 %v472_v39 }
 0x1ea   : > { %v1646_v60 = vpop.xlane.xlu0 %483 }
 0x1eb   : > { %vm485_vm3 = vcmp.eq.f32.partialorder %v1533_v53, %v1646_v60 }
 0x1ec   : > { %v486_v45 = vsel %vm485_vm3, %v481_v32, inf }
 0x1ed   : > { %487 = vmin.xlane.f32.xlu1 %v486_v45 }
 0x1f2   : > { %v1652_v6 = vpop.xlane.xlu0 %497  ;;  %v1654_v13 = vpop.xlane.xlu2 %525 }
 0x1f3   : > { %vm499_vm4 = vcmp.eq.f32.partialorder %v1545_v62, %v1652_v6  ;;  %vm527_vm5 = vcmp.eq.f32.partialorder %v1547_v63, %v1654_v13  ;;  %v409_v62 = vand.u32 65535, %v1566_v12  ;;  %v535_v63 = vand.u32 65535, %v1557_v46 }
 0x1f4   : > { %v500_v54 = vsel %vm499_vm4, %v495_v50, inf  ;;  %v528_v53 = vsel %vm527_vm5, %v523_v35, inf  ;;  %v423_v12 = vand.u32 65535, %v1582_v43  ;;  %v549_v46 = vand.u32 65535, %v1573_v52 }
 0x1f5   : > { %501 = vmin.xlane.f32.xlu1 %v500_v54  ;;  %529 = vmin.xlane.f32.xlu2 %v528_v53  ;;  %v411_v36 = vcvt.s32.f32 %v409_v62  ;;  %v537_v57 = vcvt.s32.f32 %v535_v63  ;;  %v591_v43 = vand.u32 65535, %v1598_v51  ;;  %v563_v52 = vand.u32 65535, %v1589_v58 }
 0x1f6   : > { %v551_v37 = vcvt.s32.f32 %v549_v46  ;;  %v425_v32 = vcvt.s32.f32 %v423_v12  ;;  %v605_v54 = vand.u32 65535, %v1614_v1  ;;  %v577_v51 = vand.u32 65535, %v1605_v0 }
 0x1f7   : > { %v593_v3 = vcvt.s32.f32 %v591_v43  ;;  %v565_v50 = vcvt.s32.f32 %v563_v52  ;;  %v619_v1 = vand.u32 65535, %v1623_v4  ;;  %v448_v62 = vcvt.f32.s32 %v1631_v15 }
 0x1f8   : > { %v579_v56 = vcvt.s32.f32 %v577_v51 }
 0x1f9   : > { %v621_v0 = vcvt.s32.f32 %v619_v1 }
 0x1fa   : > { %v1661_v10 = vpop.xlane.xlu0 %511  ;;  %v1663_v59 = vpop.xlane.xlu2 %539 }
 0x1fb   : > { %vm513_vm6 = vcmp.eq.f32.partialorder %v1561_v8, %v1661_v10  ;;  %vm541_vm7 = vcmp.eq.f32.partialorder %v1563_v9, %v1663_v59 }
 0x1fc   : > { %v514_v41 = vsel %vm513_vm6, %v509_v11, inf  ;;  %v542_v8 = vsel %vm541_vm7, %v537_v57, inf }
 0x1fd   : > { %515 = vmin.xlane.f32.xlu1 %v514_v41 }
 0x202   : > { %v1671_v55 = vpop.xlane.xlu0 %413  ;;  %v1673_v2 = vpop.xlane.xlu2 %553 }
 0x203   : > { %vm415_vm8 = vcmp.eq.f32.partialorder %v1577_v38, %v1671_v55  ;;  %vm555_vm9 = vcmp.eq.f32.partialorder %v1579_v42, %v1673_v2 }
 0x204   : > { %v416_v39 = vsel %vm415_vm8, %v411_v36, inf  ;;  %v556_v38 = vsel %vm555_vm9, %v551_v37, inf  ;;  %v449_v36 = vshll.u32 %v448_v62, 16 }
 0x205   : > { %417 = vmin.xlane.f32.xlu0 %v416_v39  ;;  %543 = vmin.xlane.f32.xlu1 %v542_v8  ;;  %v462_v39 = vcvt.f32.s32 %v1636_v44  ;;  %v1146_v8 = vmov 1.0   ;;  %v490_v44 = vcvt.f32.s32 %v1646_v60  ;;  %v518_v60 = vcvt.f32.s32 %v1661_v10 }
 0x207   : > { %v463_v12 = vshll.u32 %v462_v39, 16  ;;  %v491_v52 = vshll.u32 %v490_v44, 16  ;;  %v546_v39 = vcvt.f32.s32 %v1663_v59  ;;  %v560_v59 = vcvt.f32.s32 %v1673_v2 }
 0x209   : > { %v561_v44 = vshll.u32 %v560_v59, 16 }
 0x20a   : > { %v1681_v9 = vpop.xlane.xlu0 %427  ;;  %v1685_v45 = vpop.xlane.xlu2 %567 }
 0x20b   : > { %vm429_vm10 = vcmp.eq.f32.partialorder %v1593_v49, %v1681_v9  ;;  %vm569_vm11 = vcmp.eq.f32.partialorder %v1595_v48, %v1685_v45  ;;  %v607_v48 = vcvt.s32.f32 %v605_v54  ;;  %v574_v2 = vcvt.f32.s32 %v1685_v45 }
 0x20c   : > { %v430_v47 = vsel %vm429_vm10, %v425_v32, inf  ;;  %v570_v35 = vsel %vm569_vm11, %v565_v50, inf }
 0x20d   : > { %557 = vmin.xlane.f32.xlu0 %v556_v38  ;;  %431 = vmin.xlane.f32.xlu2 %v430_v47 }
 0x212   : > { %v1691_v42 = vpop.xlane.xlu0 %595  ;;  %v1697_v53 = vpop.xlane.xlu2 %581 }
 0x213   : > { %vm597_vm12 = vcmp.eq.f32.partialorder %v1609_v61, %v1691_v42  ;;  %vm583_vm13 = vcmp.eq.f32.partialorder %v1611_v40, %v1697_v53  ;;  %v588_v45 = vcvt.f32.s32 %v1697_v53 }
 0x214   : > { %v598_v49 = vsel %vm597_vm12, %v593_v3, inf  ;;  %v584_v11 = vsel %vm583_vm13, %v579_v56, inf  ;;  %v519_v56 = vshll.u32 %v518_v60, 16 }
 0x215   : > { %599 = vmin.xlane.f32.xlu1 %v598_v49  ;;  %571 = vmin.xlane.f32.xlu2 %v570_v35 }
 0x21a   : > { %v1701_v58 = vpop.xlane.xlu0 %609 }
 0x21b   : > { %vm611_vm14 = vcmp.eq.f32.partialorder %v1620_v5, %v1701_v58 }
 0x21c   : > { %v612_v61 = vsel %vm611_vm14, %v607_v48, inf }
 0x21d   : > { %613 = vmin.xlane.f32.xlu0 %v612_v61  ;;  %585 = vmin.xlane.f32.xlu1 %v584_v11 }
 0x222   : > { %v1706_v41 = vpop.xlane.xlu0 %623 }
 0x223   : > { %vm625_vm15 = vcmp.eq.f32.partialorder %v1627_v7, %v1706_v41  ;;  %v476_v7 = vcvt.f32.s32 %v1641_v14  ;;  %v504_v14 = vcvt.f32.s32 %v1652_v6  ;;  %v532_v6 = vcvt.f32.s32 %v1654_v13 }
 0x224   : > { %v626_v40 = vsel %vm625_vm15, %v621_v0, inf  ;;  %v420_v0 = vcvt.f32.s32 %v1671_v55  ;;  %v547_v55 = vshll.u32 %v546_v39, 16 }
 0x225   : > { %627 = vmin.xlane.f32.xlu2 %v626_v40  ;;  %v477_v32 = vshll.u32 %v476_v7, 16  ;;  %v505_v35 = vshll.u32 %v504_v14, 16  ;;  %v533_v62 = vshll.u32 %v532_v6, 16 }
 0x248   : > { %v446_v63 = vpop.xlane.xlu1 %445 }
 0x249   : > { %v447_v57 = vcvt.f32.s32 %v446_v63  ;;  %v421_v63 = vshll.u32 %v420_v0, 16 }
 0x24b   : > { %v450_v5 = vadd.s32 %v449_v36, %v447_v57 }
 0x24d   : > { %vm635_vm0 = vcmp.eq.s32.totalorder %v1505_v34, %v450_v5 }
 0x24e   : > { %955 = vmatmul.msk.f32.vlgmr.msra.gmra.mxu1 %vm635_vm0, %v1146_v8 }
 0x250   : > { %v460_v4 = vpop.xlane.xlu1 %459 }
 0x251   : > { %v461_v46 = vcvt.f32.s32 %v460_v4 }
 0x253   : > { %v464_v37 = vadd.s32 %v463_v12, %v461_v46  ;;  %v434_v12 = vcvt.f32.s32 %v1681_v9  ;;  %v602_v9 = vcvt.f32.s32 %v1691_v42  ;;  %v616_v42 = vcvt.f32.s32 %v1701_v58 }
 0x254   : > { %v630_v58 = vcvt.f32.s32 %v1706_v41 }
 0x255   : > { %vm636_vm1 = vcmp.eq.s32.totalorder %v1505_v34, %v464_v37  ;;  %v435_v37 = vshll.u32 %v434_v12, 16  ;;  %v617_v60 = vshll.u32 %v616_v42, 16 }
 0x256   : > { %956 = vmatmul.msk.f32.gmra.mxu1 %vm636_vm1, %v1146_v8 }
 0x258   : > { %v474_v15 = vpop.xlane.xlu1 %473 }
 0x259   : > { %v475_v38 = vcvt.f32.s32 %v474_v15 }
 0x25b   : > { %v478_v47 = vadd.s32 %v477_v32, %v475_v38 }
 0x25d   : > { %vm637_vm2 = vcmp.eq.s32.totalorder %v1505_v34, %v478_v47 }
 0x25e   : > { %957 = vmatmul.msk.f32.gmra.mxu1 %vm637_vm2, %v1146_v8 }
 0x260   : > { %v488_v43 = vpop.xlane.xlu1 %487 }
 0x261   : > { %v489_v3 = vcvt.f32.s32 %v488_v43 }
 0x263   : > { %v492_v50 = vadd.s32 %v491_v52, %v489_v3  ;;  %v603_v52 = vshll.u32 %v602_v9, 16 }
 0x265   : > { %vm638_vm3 = vcmp.eq.s32.totalorder %v1505_v34, %v492_v50 }
 0x266   : > { %958 = vmatmul.msk.f32.gmra.mxu1 %vm638_vm3, %v1146_v8 }
 0x268   : > { %v502_v49 = vpop.xlane.xlu1 %501  ;;  %v530_v11 = vpop.xlane.xlu2 %529 }
 0x269   : > { %v503_v54 = vcvt.f32.s32 %v502_v49  ;;  %v531_v40 = vcvt.f32.s32 %v530_v11 }
 0x26b   : > { %v506_v51 = vadd.s32 %v505_v35, %v503_v54  ;;  %v534_v36 = vadd.s32 %v533_v62, %v531_v40  ;;  %v575_v54 = vshll.u32 %v574_v2, 16  ;;  %v631_v40 = vshll.u32 %v630_v58, 16 }
 0x26d   : > { %vm639_vm4 = vcmp.eq.s32.totalorder %v1505_v34, %v506_v51  ;;  %vm641_vm7 = vcmp.eq.s32.totalorder %v1505_v34, %v534_v36 }
 0x26e   : > { %959 = vmatmul.msk.f32.gmra.mxu1 %vm639_vm4, %v1146_v8 }
 0x270   : > { %v516_v48 = vpop.xlane.xlu1 %515 }
 0x271   : > { %v517_v61 = vcvt.f32.s32 %v516_v48 }
 0x273   : > { %v520_v1 = vadd.s32 %v519_v56, %v517_v61 }
 0x275   : > { %vm640_vm5 = vcmp.eq.s32.totalorder %v1505_v34, %v520_v1  ;;  %v589_v1 = vshll.u32 %v588_v45, 16 }
 0x276   : > { %960 = vmatmul.msk.f32.gmra.mxu1 %vm640_vm5, %v1146_v8 }
 0x278   : > { %v418_v10 = vpop.xlane.xlu0 %417  ;;  %v544_v5 = vpop.xlane.xlu1 %543 }
 0x279   : > { %v419_v57 = vcvt.f32.s32 %v418_v10  ;;  %v545_v13 = vcvt.f32.s32 %v544_v5 }
 0x27b   : > { %v422_v4 = vadd.s32 %v421_v63, %v419_v57  ;;  %v548_v7 = vadd.s32 %v547_v55, %v545_v13 }
 0x27d   : > { %vm633_vm6 = vcmp.eq.s32.totalorder %v1505_v34, %v422_v4  ;;  %vm642_vm9 = vcmp.eq.s32.totalorder %v1505_v34, %v548_v7 }
 0x27e   : > { %953 = vmatmul.msk.f32.vlgmr.msrb.gmra.mxu0 %vm633_vm6, %v1146_v8  ;;  %961 = vmatmul.msk.f32.gmra.mxu1 %vm641_vm7, %v1146_v8 }
 0x280   : > { %v432_v46 = vpop.xlane.xlu2 %431  ;;  %v558_v32 = vpop.xlane.xlu0 %557 }
 0x281   : > { %v433_v15 = vcvt.f32.s32 %v432_v46  ;;  %v559_v47 = vcvt.f32.s32 %v558_v32 }
 0x283   : > { %v436_v38 = vadd.s32 %v435_v37, %v433_v15  ;;  %v562_v3 = vadd.s32 %v561_v44, %v559_v47 }
 0x285   : > { %vm634_vm8 = vcmp.eq.s32.totalorder %v1505_v34, %v436_v38  ;;  %vm643_vm10 = vcmp.eq.s32.totalorder %v1505_v34, %v562_v3 }
 0x286   : > { %954 = vmatmul.msk.f32.gmra.mxu0 %vm634_vm8, %v1146_v8  ;;  %962 = vmatmul.msk.f32.gmra.mxu1 %vm642_vm9, %v1146_v8 }
 0x288   : > { %v600_v43 = vpop.xlane.xlu1 %599  ;;  %v572_v14 = vpop.xlane.xlu2 %571 }
 0x289   : > { %v601_v50 = vcvt.f32.s32 %v600_v43  ;;  %v573_v35 = vcvt.f32.s32 %v572_v14 }
 0x28b   : > { %v604_v49 = vadd.s32 %v603_v52, %v601_v50  ;;  %v576_v48 = vadd.s32 %v575_v54, %v573_v35 }
 0x28d   : > { %vm646_vm11 = vcmp.eq.s32.totalorder %v1505_v34, %v604_v49  ;;  %vm644_vm12 = vcmp.eq.s32.totalorder %v1505_v34, %v576_v48 }
 0x28e   : > { %963 = vmatmul.msk.f32.gmra.mxu1 %vm643_vm10, %v1146_v8  ;;  %966 = vmatmul.msk.f32.vlgmr.msrb.gmra.mxu3 %vm646_vm11, %v1146_v8 }
 0x290   : > { %v614_v51 = vpop.xlane.xlu0 %613  ;;  %v586_v61 = vpop.xlane.xlu1 %585 }
 0x291   : > { %v615_v56 = vcvt.f32.s32 %v614_v51  ;;  %v587_v6 = vcvt.f32.s32 %v586_v61 }
 0x293   : > { %v618_v11 = vadd.s32 %v617_v60, %v615_v56  ;;  %v590_v62 = vadd.s32 %v589_v1, %v587_v6 }
 0x295   : > { %vm647_vm13 = vcmp.eq.s32.totalorder %v1505_v34, %v618_v11  ;;  %vm645_vm14 = vcmp.eq.s32.totalorder %v1505_v34, %v590_v62 }
 0x296   : > { %964 = vmatmul.msk.f32.gmra.mxu1 %vm644_vm12, %v1146_v8  ;;  %967 = vmatmul.msk.f32.gmra.mxu3 %vm647_vm13, %v1146_v8 }
 0x298   : > { %v628_v0 = vpop.xlane.xlu2 %627 }
 0x299   : > { %v629_v10 = vcvt.f32.s32 %v628_v0 }
 0x29b   : > { %v632_v53 = vadd.s32 %v631_v40, %v629_v10 }
 0x29d   : > { %vm648_vm15 = vcmp.eq.s32.totalorder %v1505_v34, %v632_v53 }
 0x29e   : > { %965 = vmatmul.msk.f32.gmra.mxu1 %vm645_vm14, %v1146_v8  ;;  %968 = vmatmul.msk.f32.gmra.mxu3 %vm648_vm15, %v1146_v8 }
 0x2cb   : > { %v704_v41 = vpop.f32.mrf.mxu1 }
 0x2cc   : > { %748 = vst [vmem:[%s1761_s8 + $0x10] sm:$0xff] %v704_v41  ;;  %v764_v55 = vsub.f32 %v704_v41, %v1410_v22 }
 0x2ce   : > { %v780_v32 = vmul.f32 %v764_v55, %v764_v55 }
 0x2d3   : > { %v707_v34 = vpop.f32.mrf.mxu1 }
 0x2d4   : > { %749 = vst [vmem:[%s1761_s8 + $0x18] sm:$0xff] %v707_v34  ;;  %v765_v37 = vsub.f32 %v707_v34, %v1429_v25 }
 0x2d6   : > { %v781_v9 = vmul.f32 %v765_v37, %v765_v37 }
 0x2db   : > { %v710_v63 = vpop.f32.mrf.mxu1 }
 0x2dc   : > { %750 = vst [vmem:[%s1761_s8 + $0x20] sm:$0xff] %v710_v63  ;;  %v766_v59 = vsub.f32 %v710_v63, %v1448_v28 }
 0x2de   : > { %v782_v22 = vmul.f32 %v766_v59, %v766_v59 }
 0x2e3   : > { %v713_v8 = vpop.f32.mrf.mxu1 }
 0x2e4   : > { %751 = vst [vmem:[%s1761_s8 + $0x28] sm:$0xff] %v713_v8 }
 0x2eb   : > { %v716_v36 = vpop.f32.mrf.mxu1 }
 0x2ec   : > { %752 = vst [vmem:[%s1761_s8 + $0x30] sm:$0xff] %v716_v36  ;;  %v768_v43 = vsub.f32 %v716_v36, %v1394_v20 }
 0x2ee   : > { %v784_v50 = vmul.f32 %v768_v43, %v768_v43 }
 0x2f3   : > { %v719_v57 = vpop.f32.mrf.mxu1 }
 0x2f4   : > { %753 = vst [vmem:[%s1761_s8 + $0x38] sm:$0xff] %v719_v57  ;;  %v769_v25 = vsub.f32 %v719_v57, %v1413_v23 }
 0x2fb   : > { %v698_v5 = vpop.f32.mrf.mxu0  ;;  %v722_v39 = vpop.f32.mrf.mxu1 }
 0x2fc   : > { %746 = vst [vmem:[%s1761_s8] sm:$0xff] %v698_v5  ;;  %v762_v4 = vsub.f32 %v698_v5, %v1372_v16  ;;  %v767_v16 = vsub.f32 %v713_v8, %v1375_v17  ;;  %v770_v28 = vsub.f32 %v722_v39, %v1432_v26  ;;  %v785_v17 = vmul.f32 %v769_v25, %v769_v25 }
 0x2fd   : > { %754 = vst [vmem:[%s1761_s8 + $0x40] sm:$0xff] %v722_v39 }
 0x2fe   : > { %v778_v7 = vmul.f32 %v762_v4, %v762_v4  ;;  %v786_v35 = vmul.f32 %v770_v28, %v770_v28 }
 0x303   : > { %v701_v12 = vpop.f32.mrf.mxu0  ;;  %v725_v13 = vpop.f32.mrf.mxu1 }
 0x304   : > { %747 = vst [vmem:[%s1761_s8 + $0x8] sm:$0xff] %v701_v12  ;;  %v763_v46 = vsub.f32 %v701_v12, %v1391_v19  ;;  %v783_v19 = vmul.f32 %v767_v16, %v767_v16  ;;  %v771_v49 = vsub.f32 %v725_v13, %v1451_v29 }
 0x305   : > { %755 = vst [vmem:[%s1761_s8 + $0x48] sm:$0xff] %v725_v13 }
 0x306   : > { %v779_v15 = vmul.f32 %v763_v46, %v763_v46  ;;  %v787_v23 = vmul.f32 %v771_v49, %v771_v49 }
 0x308   : > { %v794_v38 = vadd.f32 %v779_v15, %v778_v7 }
 0x30a   : > { %v795_v47 = vadd.f32 %v794_v38, %v780_v32 }
 0x30b   : > { %v728_v44 = vpop.f32.mrf.mxu1 }
 0x30c   : > { %v796_v52 = vadd.f32 %v795_v47, %v781_v9  ;;  %756 = vst [vmem:[%s1761_s8 + $0x50] sm:$0xff] %v728_v44  ;;  %v772_v51 = vsub.f32 %v728_v44, %v1460_v30 }
 0x30e   : > { %v797_v3 = vadd.f32 %v796_v52, %v782_v22  ;;  %v788_v48 = vmul.f32 %v772_v51, %v772_v51 }
 0x310   : > { %v798_v14 = vadd.f32 %v797_v3, %v783_v19 }
 0x311   : > { %v737_v2 = vpop.f32.mrf.mxu3 }
 0x312   : > { %v799_v42 = vadd.f32 %v798_v14, %v784_v50  ;;  %759 = vst [vmem:[%s1761_s8 + $0x68] sm:$0xff] %v737_v2  ;;  %v775_v11 = vsub.f32 %v737_v2, %v1398_v21 }
 0x313   : > { %v731_v20 = vpop.f32.mrf.mxu1 }
 0x314   : > { %v800_v54 = vadd.f32 %v799_v42, %v785_v17  ;;  %757 = vst [vmem:[%s1761_s8 + $0x58] sm:$0xff] %v731_v20  ;;  %v773_v56 = vsub.f32 %v731_v20, %v1465_v31  ;;  %v791_v0 = vmul.f32 %v775_v11, %v775_v11 }
 0x316   : > { %v801_v60 = vadd.f32 %v800_v54, %v786_v35  ;;  %v789_v30 = vmul.f32 %v773_v56, %v773_v56 }
 0x318   : > { %v802_v26 = vadd.f32 %v801_v60, %v787_v23 }
 0x319   : > { %v740_v61 = vpop.f32.mrf.mxu3 }
 0x31a   : > { %v803_v29 = vadd.f32 %v802_v26, %v788_v48  ;;  %760 = vst [vmem:[%s1761_s8 + $0x70] sm:$0xff] %v740_v61  ;;  %v776_v31 = vsub.f32 %v740_v61, %v1417_v24 }
 0x31b   : > { %v734_v45 = vpop.f32.mrf.mxu1 }
 0x31c   : > { %758 = vst [vmem:[%s1761_s8 + $0x60] sm:$0xff] %v734_v45  ;;  %v774_v58 = vsub.f32 %v734_v45, %v1380_v18  ;;  %v804_v6 = vadd.f32 %v803_v29, %v789_v30  ;;  %v792_v10 = vmul.f32 %v776_v31, %v776_v31 }
 0x31e   : > { %v790_v1 = vmul.f32 %v774_v58, %v774_v58 }
 0x320   : > { %v805_v40 = vadd.f32 %v804_v6, %v790_v1 }
 0x321   : > { %v743_v62 = vpop.f32.mrf.mxu3 }
 0x322   : > { %v806_v21 = vadd.f32 %v805_v40, %v791_v0  ;;  %761 = vst [vmem:[%s1761_s8 + $0x78] sm:$0xff] %v743_v62  ;;  %v777_v53 = vsub.f32 %v743_v62, %v1436_v27 }
 0x323   : > { %1109 = shalt.err (!%p1106_p3)
}
 0x324   : > { %s1147_s6 = smov 128   ;;  %s1148_s7 = smov 8   ;;  %v793_v18 = vmul.f32 %v777_v53, %v777_v53  ;;  %v807_v24 = vadd.f32 %v806_v21, %v792_v10  ;;  %v816_v8 = vshrl.u32 %v343_v33, 7 }
 0x325   : > { %1039 = dma.vmem_to_hbm [thread:$0]  (%p1212_p5), %s838_s13, 2048, %s840_s14, %s821_s20, %s1147_s6, %s1147_s6, %s1148_s7  }
 0x326   : > { %v808_v27 = vadd.f32 %v807_v24, %v793_v18  ;;  %p206_p4 = scmp.lt.s32.totalorder %s1195_s19, 3  ;;  %vm817_vm0 = vcmp.eq.s32.totalorder %v816_v8, 0 }
 0x328   : > { %v809_v41 = vrot.slane %v808_v27, 4  ;;  %s1849_s19 = smov (!%p206_p4, %s1195_s19), 3 }
 0x329   : > { %s936_s8 = sshll.u32 %s1849_s19, 3 }
 0x32a   : > { %v810_v34 = vadd.f32 %v809_v41, %v808_v27  ;;  %s209_s11 = scalar_lea.vmem %s1839_s4, %s936_s8 }
 0x32c   : > { %v811_v63 = vrot.slane %v810_v34, 2 }
 0x32e   : > { %v812_v36 = vadd.f32 %v811_v63, %v810_v34 }
 0x330   : > { %v813_v57 = vrot.slane %v812_v36, 1 }
 0x332   : > { %v814_v5 = vadd.f32 %v813_v57, %v812_v36 }
 0x334   : > { %v818_v39 = vsel %vm817_vm0, %v814_v5, 0.0 }
 0x335   : > { %819 = vst [vmem:[%s209_s11] sm:$0xff] %v818_v39 }
 0x336 PF: > { %p1045_p5 = scmp.ge.s32.totalorder %s1144_s18, 2  ;;  %s857_s25 = sand.u32 1, %s1132_s15  }
 0x337   : > { %s858_s12 = scalar_lea.sflag [#allocation3], %s857_s25 }
 0x338   : > { %p1042_p7 = pnand %p1045_p5, %p1216_p6 }
 0x33a   : > { %p1043_p8 = pneg %p1042_p7 }
 0x33c   : > { %1127 = dma.done.wait (%p1043_p8), %s858_s12, 2048  }
 0x33d   : > { %1129 = vsyncadd (%p1043_p8), %s858_s12, 4294965248  ;;  %p15_p9 = scmp.ge.s32.totalorder %s1199_s21, 6   ;;  %s1842_s15 = smov %s1136_s16 }
 0x33e   : > { %s1843_s16 = smov %s1140_s17  ;;  %s1844_s17 = smov %s1210_s24 }
 0x33f   : > { %s1845_s18 = smov %s1199_s21  ;;  %17 = sbr.rel (!%p15_p9) target bundleno = 3 (0x3), region = 79 }
 0x344   :  { %871 = vsyncpa [#allocation3], 1 }
 0x345   :  { %873 = vsyncpa [#allocation3 + $0x1], 1 }

</bundles_post_ra>
